<compile_context>
chip_gen: v6e
topology: v6e:2x2x1
jax: 0.10.0
libtpu: 0.0.40
codegen_flags: <defaults>
</compile_context>

<pallas_src>
import jax
import jax.numpy as jnp
from jax import lax
from jax.experimental import pallas as pl
from jax.experimental.pallas import tpu as pltpu

_LANE = 128
_MAX_CHUNK = 1024  # lanes per in-kernel compute chunk


def _round_up(x, m):
    return ((x + m - 1) // m) * m


def _vmem_capacity_bytes():
    try:
        info = pltpu.get_tpu_info()
        cap = int(getattr(info, "vmem_capacity_bytes", 0))
        if cap > 0:
            return cap
    except Exception:
        pass
    return 64 * 1024 * 1024  # conservative fallback (v7x per-TC VMEM)


def _pick_chunk(tile_hw):
    for c in (2048, 1024, 512, 256, 128):
        if c <= _MAX_CHUNK and c <= tile_hw and tile_hw % c == 0:
            return c
    return tile_hw


def _pick_tile_hw(hw128, c, n, in_bytes, out_bytes, vmem_cap):
    """Largest 128-multiple spatial tile whose resident VMEM fits the budget."""
    budget = int(0.70 * vmem_cap)
    # Per grid step: double-buffered input tile + double-buffered output tile.
    per_col = c * (2 * in_bytes + 2 * out_bytes)
    # Params (double-buffered) + chunk-sized f32 compute temporaries
    # (x, h1, h2, residual, bias broadcast) -- previously uncounted.
    param = 2 * (2 * c * c * in_bytes + 2 * c * 4)
    temps = 5 * c * _MAX_CHUNK * 4
    avail = max(budget - param - temps, per_col * _LANE)
    tile = (avail // per_col // _LANE) * _LANE
    tile = max(_LANE, min(tile, hw128))
    if n == 1 and hw128 >= 2 * _LANE:
        # Keep >= 2 spatial blocks so both v7x TensorCores get work.
        tile = min(tile, max(_LANE, ((hw128 // 2) // _LANE) * _LANE))
    return tile


def _make_kernel(chunk, num_chunks):
    def kernel(x_ref, w1_ref, w2_ref, b1_ref, b2_ref, o_ref):
        # Hoist the small params once per tile.
        w1 = w1_ref[...]
        w2 = w2_ref[...]
        b1 = b1_ref[...]
        b2 = b2_ref[...]

        def body(j, carry):
            start = pl.multiple_of(j * chunk, _LANE)
            xb = x_ref[:, pl.ds(start, chunk)]                    # (C, chunk) bf16
            # conv1 (1x1, BN scale pre-folded) -> +bias -> relu
            h = jnp.dot(w1, xb, preferred_element_type=jnp.float32)
            h = jnp.maximum(h + b1, 0.0)
            # conv2 (1x1, BN scale pre-folded) -> +bias
            h = jnp.dot(w2, h.astype(w2.dtype),
                        preferred_element_type=jnp.float32)
            h = h + b2 + xb.astype(jnp.float32)                   # identity residual
            o_ref[:, pl.ds(start, chunk)] = jnp.maximum(h, 0.0).astype(o_ref.dtype)
            return carry

        lax.fori_loop(0, num_chunks, body, 0, unroll=(num_chunks <= 8))

    return kernel


def basic_block_pallas(x_nchw, w1, w2, scale1, bias1, scale2, bias2,
                       *, io_dtype=jnp.bfloat16, out_dtype=None):
    """x_nchw: (N, C, H, W); w1, w2: (Cout, Cin) 1x1 conv weights;
    scale/bias: folded eval-mode BatchNorm parameters, shape (C,)."""
    N, C, H, W = x_nchw.shape
    HW = H * W
    out_dtype = x_nchw.dtype if out_dtype is None else out_dtype
    in_bytes = jnp.dtype(io_dtype).itemsize
    out_bytes = jnp.dtype(out_dtype).itemsize

    vmem_cap = _vmem_capacity_bytes()
    hw128 = _round_up(HW, _LANE)
    tile_hw = _pick_tile_hw(hw128, C, N, in_bytes, out_bytes, vmem_cap)
    chunk = _pick_chunk(tile_hw)
    num_chunks = tile_hw // chunk

    # Zero-pad the flattened spatial dim so every block is full and lane-dense
    # (pure reshape + pad, no transpose; channels on sublanes, spatial on lanes).
    hw_pad = _round_up(HW, tile_hw)
    x_flat = x_nchw.reshape(N, C, HW).astype(io_dtype)
    if hw_pad != HW:
        x_flat = jnp.pad(x_flat, ((0, 0), (0, 0), (0, hw_pad - HW)))

    # Fold eval-mode BN scale into the conv weights (per output channel).
    w1f = (w1 * scale1[:, None]).astype(io_dtype)
    w2f = (w2 * scale2[:, None]).astype(io_dtype)
    b1 = bias1.reshape(C, 1).astype(jnp.float32)
    b2 = bias2.reshape(C, 1).astype(jnp.float32)

    grid = (N, hw_pad // tile_hw)
    act_in_spec = pl.BlockSpec((pl.Squeezed(), C, tile_hw), lambda n, s: (n, 0, s))
    act_out_spec = pl.BlockSpec((pl.Squeezed(), C, tile_hw), lambda n, s: (n, 0, s))
    w_spec = pl.BlockSpec((C, C), lambda n, s: (0, 0))
    b_spec = pl.BlockSpec((C, 1), lambda n, s: (0, 0))

    # VMEM demand: 2x in tile + 2x out tile (pipeline double-buffering),
    # params (double-buffered) and the chunk-sized compute temporaries.
    vmem_need = (2 * C * tile_hw * in_bytes + 2 * C * tile_hw * out_bytes
                 + 2 * (2 * C * C * in_bytes + 2 * C * 4)
                 + 5 * C * chunk * 4)
    vmem_limit = int(1.25 * vmem_need)
    vmem_limit = max(4 * 1024 * 1024, min(vmem_limit, int(0.85 * vmem_cap)))

    cost = pl.CostEstimate(
        flops=4 * N * C * C * hw_pad,                       # two CxC matmuls
        transcendentals=0,
        bytes_accessed=(N * C * hw_pad * (in_bytes + out_bytes)
                        + 2 * C * C * in_bytes + 4 * C * 4))

    out_flat = pl.pallas_call(
        _make_kernel(chunk, num_chunks),
        out_shape=jax.ShapeDtypeStruct((N, C, hw_pad), out_dtype),
        grid_spec=pltpu.PrefetchScalarGridSpec(
            num_scalar_prefetch=0,
            grid=grid,
            in_specs=[act_in_spec, w_spec, w_spec, b_spec, b_spec],
            out_specs=act_out_spec,
        ),
        compiler_params=pltpu.CompilerParams(
            dimension_semantics=("parallel", "parallel"),
            vmem_limit_bytes=vmem_limit),
        cost_estimate=cost,
    )(x_flat, w1f, w2f, b1, b2)

    if hw_pad != HW:
        out_flat = out_flat[:, :, :HW]
    return out_flat.reshape(N, C, H, W)


def basic_block_reference(x, w1, w2, scale1, bias1, scale2, bias2):
    """Pure-JAX reference mirroring the PyTorch forward (eval-mode BN), NCHW."""
    hp = lax.Precision.HIGHEST
    h = jnp.einsum('oi,nihw->nohw', w1, x, precision=hp)
    h = h * scale1[None, :, None, None] + bias1[None, :, None, None]
    h = jnp.maximum(h, 0.0)
    h = jnp.einsum('oi,nihw->nohw', w2, h, precision=hp)
    h = h * scale2[None, :, None, None] + bias2[None, :, None, None]
    return jnp.maximum(h + x, 0.0)


def fold_bn(gamma, beta, running_mean, running_var, eps=1e-5):
    scale = gamma / jnp.sqrt(running_var + eps)
    bias = beta - running_mean * scale
    return scale, bias


if __name__ == "__main__":
    key = jax.random.PRNGKey(0)
    N, C, H, W = 2, 8, 16, 16   # inplanes == planes == 8 (identity residual)

    keys = jax.random.split(key, 9)
    x = jax.random.normal(keys[0], (N, C, H, W), dtype=jnp.float32)

    # conv1x1 weights: PyTorch (out, in, 1, 1) -> stored as (out, in)
    w1 = jax.random.normal(keys[1], (C, C), dtype=jnp.float32) * 0.2
    w2 = jax.random.normal(keys[2], (C, C), dtype=jnp.float32) * 0.2

    # BatchNorm (inference mode) parameters, folded into scale/bias.
    gamma1 = 1.0 + 0.1 * jax.random.normal(keys[3], (C,), dtype=jnp.float32)
    beta1 = 0.1 * jax.random.normal(keys[4], (C,), dtype=jnp.float32)
    mean1 = 0.1 * jax.random.normal(keys[5], (C,), dtype=jnp.float32)
    var1 = 1.0 + 0.1 * jax.random.uniform(keys[6], (C,), dtype=jnp.float32)
    gamma2 = jnp.ones((C,), dtype=jnp.float32)
    beta2 = jnp.zeros((C,), dtype=jnp.float32)
    mean2 = 0.1 * jax.random.normal(keys[7], (C,), dtype=jnp.float32)
    var2 = 1.0 + 0.1 * jax.random.uniform(keys[8], (C,), dtype=jnp.float32)

    s1, b1 = fold_bn(gamma1, beta1, mean1, var1)
    s2, b2 = fold_bn(gamma2, beta2, mean2, var2)

    out = basic_block_pallas(x, w1, w2, s1, b1, s2, b2)
    out = jax.block_until_ready(out)

    ref = basic_block_reference(x, w1, w2, s1, b1, s2, b2)
    assert out.shape == (N, C, H, W)
    assert out.dtype == x.dtype
    # Kernel does bf16 activation/weight I/O; compare against the full-f32
    # reference with a correspondingly relaxed tolerance.
    assert jnp.allclose(out, ref, atol=5e-2, rtol=5e-2), "mismatch vs reference"

    print("KERNEL_OK")
</pallas_src>

<mosaic_0001>
module attributes {stable_mosaic.version = 11 : i64} {
  func.func @kernel(%arg0: i32, %arg1: i32, %arg2: memref<1x8x256xbf16, #tpu.memory_space<vmem>>, %arg3: memref<8x8xbf16, #tpu.memory_space<vmem>>, %arg4: memref<8x8xbf16, #tpu.memory_space<vmem>>, %arg5: memref<8x1xf32, #tpu.memory_space<vmem>>, %arg6: memref<8x1xf32, #tpu.memory_space<vmem>>, %arg7: memref<1x8x256xf32, #tpu.memory_space<vmem>>) attributes {dimension_semantics = [#tpu.dimension_semantics<parallel>, #tpu.dimension_semantics<parallel>], iteration_bounds = array<i64: 2, 1>, scalar_prefetch = 0 : i64, scratch_operands = 0 : i64, tpu.core_type = #tpu.core_type<tc>, window_params = [{transform_indices = @transform_0, window_bounds = array<i64: 1, 8, 256>}, {pipeline_mode = #tpu.pipeline_mode<synchronous>, transform_indices = @transform_1, window_bounds = array<i64: 8, 8>}, {pipeline_mode = #tpu.pipeline_mode<synchronous>, transform_indices = @transform_2, window_bounds = array<i64: 8, 8>}, {pipeline_mode = #tpu.pipeline_mode<synchronous>, transform_indices = @transform_3, window_bounds = array<i64: 8, 1>}, {pipeline_mode = #tpu.pipeline_mode<synchronous>, transform_indices = @transform_4, window_bounds = array<i64: 8, 1>}, {transform_indices = @transform_5, window_bounds = array<i64: 1, 8, 256>}]} {
    %c0 = arith.constant 0 : index
    %c0_0 = arith.constant 0 : index
    %0 = vector.load %arg3[%c0, %c0_0] : memref<8x8xbf16, #tpu.memory_space<vmem>>, vector<8x8xbf16>
    %c0_1 = arith.constant 0 : index
    %c0_2 = arith.constant 0 : index
    %1 = vector.load %arg4[%c0_1, %c0_2] : memref<8x8xbf16, #tpu.memory_space<vmem>>, vector<8x8xbf16>
    %c0_3 = arith.constant 0 : index
    %c0_4 = arith.constant 0 : index
    %2 = vector.load %arg5[%c0_3, %c0_4] : memref<8x1xf32, #tpu.memory_space<vmem>>, vector<8x1xf32>
    %c0_5 = arith.constant 0 : index
    %c0_6 = arith.constant 0 : index
    %3 = vector.load %arg6[%c0_5, %c0_6] : memref<8x1xf32, #tpu.memory_space<vmem>>, vector<8x1xf32>
    %c0_i32 = arith.constant 0 : i32
    %c256_i32 = arith.constant 256 : i32
    %4 = arith.muli %c0_i32, %c256_i32 : i32
    %5 = tpu.assume_multiple %4, 128 : i32
    %c0_7 = arith.constant 0 : index
    %c0_8 = arith.constant 0 : index
    %6 = arith.index_cast %5 : i32 to index
    %7 = vector.load %arg2[%c0_7, %c0_8, %6] : memref<1x8x256xbf16, #tpu.memory_space<vmem>>, vector<1x8x256xbf16>
    %8 = vector.shape_cast %7 : vector<1x8x256xbf16> to vector<8x256xbf16>
    %cst = arith.constant dense<0.000000e+00> : vector<8x256xf32>
    %9 = tpu.matmul %0, %8, %cst {dimension_numbers = #tpu.dot_dimension_numbers<[1], [0], [0], [1], [0, 0, 1, 1], [], []>} : vector<8x8xbf16>, vector<8x256xbf16>, vector<8x256xf32> -> vector<8x256xf32>
    %10 = vector.broadcast %2 : vector<8x1xf32> to vector<8x256xf32>
    %11 = arith.addf %9, %10 : vector<8x256xf32>
    %cst_9 = arith.constant 0.000000e+00 : f32
    %12 = vector.broadcast %cst_9 : f32 to vector<8x256xf32>
    %13 = arith.maximumf %11, %12 : vector<8x256xf32>
    %14 = arith.truncf %13 : vector<8x256xf32> to vector<8x256xbf16>
    %cst_10 = arith.constant dense<0.000000e+00> : vector<8x256xf32>
    %15 = tpu.matmul %1, %14, %cst_10 {dimension_numbers = #tpu.dot_dimension_numbers<[1], [0], [0], [1], [0, 0, 1, 1], [], []>} : vector<8x8xbf16>, vector<8x256xbf16>, vector<8x256xf32> -> vector<8x256xf32>
    %16 = vector.broadcast %3 : vector<8x1xf32> to vector<8x256xf32>
    %17 = arith.addf %15, %16 : vector<8x256xf32>
    %18 = arith.extf %8 : vector<8x256xbf16> to vector<8x256xf32>
    %19 = arith.addf %17, %18 : vector<8x256xf32>
    %cst_11 = arith.constant 0.000000e+00 : f32
    %20 = vector.broadcast %cst_11 : f32 to vector<8x256xf32>
    %21 = arith.maximumf %19, %20 : vector<8x256xf32>
    %c0_12 = arith.constant 0 : index
    %c0_13 = arith.constant 0 : index
    %22 = arith.index_cast %5 : i32 to index
    %23 = vector.load %arg7[%c0_12, %c0_13, %22] : memref<1x8x256xf32, #tpu.memory_space<vmem>>, vector<1x8x256xf32>
    %24 = vector.shape_cast %23 : vector<1x8x256xf32> to vector<8x256xf32>
    %25 = vector.shape_cast %21 : vector<8x256xf32> to vector<1x8x256xf32>
    tpu.vector_store %arg7[%c0_12, %c0_13, %22], %25 {strides = array<i32>} : memref<1x8x256xf32, #tpu.memory_space<vmem>>, vector<1x8x256xf32>,
    %c1_i32 = arith.constant 1 : i32
    return
  }
  func.func @transform_0(%arg0: i32, %arg1: i32) -> (i32, i32, i32) {
    %c0_i32 = arith.constant 0 : i32
    %c0_i32_0 = arith.constant 0 : i32
    return %arg0, %c0_i32, %arg1 : i32, i32, i32
  }
  func.func @transform_1(%arg0: i32, %arg1: i32) -> (i32, i32) {
    %c0_i32 = arith.constant 0 : i32
    %c0_i32_0 = arith.constant 0 : i32
    %c0_i32_1 = arith.constant 0 : i32
    return %c0_i32, %c0_i32_0 : i32, i32
  }
  func.func @transform_2(%arg0: i32, %arg1: i32) -> (i32, i32) {
    %c0_i32 = arith.constant 0 : i32
    %c0_i32_0 = arith.constant 0 : i32
    %c0_i32_1 = arith.constant 0 : i32
    return %c0_i32, %c0_i32_0 : i32, i32
  }
  func.func @transform_3(%arg0: i32, %arg1: i32) -> (i32, i32) {
    %c0_i32 = arith.constant 0 : i32
    %c0_i32_0 = arith.constant 0 : i32
    %c0_i32_1 = arith.constant 0 : i32
    return %c0_i32, %c0_i32_0 : i32, i32
  }
  func.func @transform_4(%arg0: i32, %arg1: i32) -> (i32, i32) {
    %c0_i32 = arith.constant 0 : i32
    %c0_i32_0 = arith.constant 0 : i32
    %c0_i32_1 = arith.constant 0 : i32
    return %c0_i32, %c0_i32_0 : i32, i32
  }
  func.func @transform_5(%arg0: i32, %arg1: i32) -> (i32, i32, i32) {
    %c0_i32 = arith.constant 0 : i32
    %c0_i32_0 = arith.constant 0 : i32
    return %arg0, %c0_i32, %arg1 : i32, i32, i32
  }
}

</mosaic_0001>

<bundles_post_ra>
// kernel: tpu_custom_call.1
= control target key start
LH: loop header
LB: loop body
LE: loop exit
PB: predicated region body
PF: predicated region fallthrough
CT: control target
= control target key end

     0   :  { %10 = vsyncpa [#allocation3], 0  ;;  %s876_s0 = inlined_call_operand.vmem [shape: bf16[2,8,256], index: 0, kind: input, shape index: {}]   ;;  %s877_s1 = inlined_call_operand.hbm [shape: bf16[8,8], index: 1, kind: input, shape index: {}]   ;;  %s878_s2 = inlined_call_operand.vmem [shape: bf16[8,8], index: 2, kind: input, shape index: {}]   ;;  %s879_s3 = inlined_call_operand.vmem [shape: f32[8,1], index: 3, kind: input, shape index: {}]   ;;  %s880_s4 = inlined_call_operand.vmem [shape: f32[8,1], index: 4, kind: input, shape index: {}]   ;;  %s881_s5 = inlined_call_operand.hbm [shape: f32[2,8,256], index: 5, kind: output, shape index: {}]  }
   0x1   :  { %11 = vsyncpa [#allocation4], 0 }
   0x2   :  { %13 = vsyncpa [#allocation4 + $0x1], 0  ;;  %s741_s18 = smov 0   ;;  %s743_s19 = smov 0  }
   0x3   :  { %s745_s20 = smov 0   ;;  %s747_s21 = smov 0  }
   0x4   :  { %s749_s22 = smov 0   ;;  %s751_s23 = smov 0  }
   0x5 LB: > { %s507_s24 = sadd.s32 4294967295, %s706_s23   ;;  %s508_s25 = sadd.s32 4294967294, %s706_s23   ;;  %s706_s23 = sphi %s751_s23, %s19_s23   ;;  %s702_s22 = sphi %s749_s22, %s890_s22   ;;  %s698_s21 = sphi %s747_s21, %s889_s21   ;;  %s694_s20 = sphi %s745_s20, %s888_s20   ;;  %s690_s19 = sphi %s743_s19, %s887_s19   ;;  %s686_s18 = sphi %s741_s18, %s886_s18  }
   0x6   : > { %s31_s26 = sadd.s32 1, %s702_s22  ;;  %s152_s27 = sadd.s32 1, %s694_s20 }
   0x7   : > { %p33_p0 = scmp.ge.s32.totalorder %s31_s26, 2  ;;  %p162_p1 = scmp.ne.s32.totalorder %s694_s20, %s690_s19 }
   0x8   : > { %p163_p2 = scmp.eq.s32.totalorder %s507_s24, 1  ;;  %p168_p3 = scmp.ne.s32.totalorder %s690_s19, %s686_s18 }
   0x9   : > { %s892_s26 = smov (%p33_p0, %s31_s26), 0  ;;  %p169_p5 = scmp.eq.s32.totalorder %s508_s25, 1 }
   0xa   : > { %p781_p4 = por %p163_p2, %p162_p1  ;;  %s147_s29 = ssub.s32 %s702_s22, %s892_s26 }
   0xb   : > { %p509_p6 = scmp.ge.s32.totalorder %s706_s23, 1  ;;  %p150_p7 = scmp.eq.s32.totalorder %s147_s29, 0 }
   0xc   : > { %p788_p8 = por %p169_p5, %p168_p3  ;;  %p176_p9 = scmp.lt.s32.totalorder %s706_s23, 3 }
   0xd   : > { %s794_s6 = scalar_select %p150_p7, %s694_s20, %s152_s27  }
   0xe   : > { %p796_p10 = pnand %p509_p6, %p176_p9  ;;  %p800_p11 = scmp.eq.s32.totalorder %s507_s24, 0 }
   0xf   : > { %s708_s9 = smov [#allocation2]  }
  0x10   : > { %p536_p12 = pneg %p796_p10  ;;  %s189_s10 = sshll.u32 %s708_s9, 4  ;;  %s190_s10 = int_to_ptr.vmem [resolvable:$true] %s189_s10 }
  0x11   : > { %s611_s11 = scalar_lea.vmem %s190_s10, 64  ;;  %p619_p5 = scmp.lt.s32.totalorder %s190_s10, %s190_s10 }
  0x12   : > { %p537_p13 = pnand %p800_p11, %p536_p12  ;;  %p612_p1 = scmp.ne.s32.totalorder %s190_s10, %s611_s11 }
  0x13   : > { %p620_p6 = scmp.lt.s32.totalorder %s611_s11, %s611_s11 }
  0x14   : > { %p602_p0 = pneg %p537_p13 }
  0x15   : > { %p621_p7 = por %p620_p6, %p619_p5 }
  0x16   : > { %p614_p2 = pnand %p612_p1, %p602_p0 }
  0x18   : > { %p615_p3 = pneg %p614_p2 }
  0x1a   : > { %p622_p9 = pnand %p621_p7, %p615_p3 }
  0x1c   : > { %625 = shalt.err (!%p622_p9)
}
  0x1d   : > { %539 = dma.hbm_to_vmem [thread:$0]  (!%p537_p13), %s877_s1, 64, %s190_s10, [#allocation3]  }
  0x1e   : > { %224 = sbr.rel (%p796_p10) target bundleno = 468 (0x1d4), region = 40 }
  0x23   : > { %677 = dma.done.wait (%p800_p11), [#allocation3], 64  }
  0x24   : > { %679 = vsyncadd (%p800_p11), [#allocation3], 4294967232  ;;  %p257_p12 = scmp.lt.s32.totalorder %s698_s21, 1  ;;  %v709_v0 = vmov 0   ;;  %vm287_vm0 = vcmask 1043456   ;;  %v270_v2 = vld [vmem:[%s879_s3] sm:$0xff] }
  0x25   : > { %326 = vmatprep.mubr.bf16.mxu0 %v709_v0  ;;  %597 = vset.pattern.permute.xlu0 %v709_v0  ;;  %v271_v5 = vld [vmem:[%s880_s4] sm:$0xff]  ;;  %vm283_vm1 = vcmask 64512   ;;  %s253_s10 = sand.u32 1, %s690_s19   ;;  %s529_s12 = sshll.u32 %s698_s21, 8 }
  0x26   : > { %s258_s14 = scalar_select %p257_p12, %s698_s21, 1  ;;  %385 = vmatprep.mubr.bf16.mxu1 %v709_v0  ;;  %275 = vperm.xlu0 %597, %v270_v2   ;;  %v268_v7 = vld [vmem:[#allocation2] sm:$0xf] }
  0x27   : > { %v269_v20 = vld [vmem:[%s878_s2] sm:$0xf]  ;;  %s514_s11 = sshll.u32 %s253_s10, 4  ;;  %s417_s17 = scalar_lea.hbm %s881_s5, %s529_s12 }
  0x28   : > { %s528_s15 = sshll.u32 %s258_s14, 3  ;;  %s255_s13 = scalar_lea.vmem [#allocation5], %s514_s11 }
  0x29   : > { %s264_s24 = scalar_lea.vmem %s876_s0, %s528_s15  ;;  %s419_s14 = sshll.u32 %s255_s13, 4  ;;  %s420_s14 = int_to_ptr.vmem [resolvable:$true] %s419_s14 }
  0x2a   : > { %v272_v1 = vld [vmem:[%s264_s24] sm:$0xff]  ;;  %341 = vperm.xlu0 %597, %v271_v5   ;;  %s403_s24 = scalar_lea.sflag [#allocation4], %s253_s10  ;;  %s626_s25 = scalar_lea.vmem %s420_s14, 256 }
  0x2b   : > { %v518_v3 = vcombine.high %v272_v1, %v272_v1  ;;  %v517_v4 = vcombine.low %v272_v1, %v272_v1  ;;  %v394_v21 = vunpack.c.l.bf16 %v272_v1  ;;  %v395_v25 = vunpack.c.h.bf16 %v272_v1  ;;  %p627_p10 = scmp.ne.s32.totalorder %s420_s14, %s626_s25  ;;  %s710_s21 = smov [#allocation5]  }
  0x2c   : > { %s630_s27 = sshll.u32 %s710_s21, 4  ;;  %s631_s27 = int_to_ptr.vmem [resolvable:$false] %s630_s27 }
  0x2d   : > { %519 = vmatprep.subr.msk.bf16.mxu0 %vm287_vm0, %v518_v3  ;;  %v289_v6 = vsel %vm287_vm0, %v517_v4, 0  ;;  %p628_p11 = pnand %p627_p10, %p781_p4  ;;  %s632_s29 = scalar_lea.vmem %s631_s27, 512 }
  0x2e   : > { %309 = vmatpush1.bf16.msra.mxu0 %v289_v6  ;;  %p633_p0 = scmp.lt.s32.totalorder %s420_s14, %s631_s27  ;;  %p634_p1 = scmp.lt.s32.totalorder %s632_s29, %s626_s25 }
  0x2f   : > { %p629_p13 = pneg %p628_p11 }
  0x30   : > { %p635_p2 = por %p634_p1, %p633_p0 }
  0x31   : > { %520 = vmatmul.mubr.msk.bf16.vlgmr.msra.gmra.mxu0 %vm283_vm1, %v268_v7 }
  0x32   : > { %p636_p3 = pnand %p635_p2, %p629_p13 }
  0xa1   : > { %v276_v8 = vpop.permute.xlu0 %275 }
  0xa5   : > { %v342_v22 = vpop.permute.xlu0 %341 }
  0xf1   : > { %v328_v9 = vpop.f32.mrf.mxu0 }
  0xf2   : > { %v329_v10 = vadd.f32 %v328_v9, %v276_v8 }
  0xf3   : > { %v330_v11 = vpop.f32.mrf.mxu0 }
  0xf4   : > { %v335_v12 = vmax.f32 %v329_v10, 0.0  ;;  %v331_v13 = vadd.f32 %v330_v11, %v276_v8 }
  0xf5   : > { %v332_v14 = vpop.f32.mrf.mxu0 }
  0xf6   : > { %v337_v15 = vpack.c.bf16 %v335_v12, %v335_v12  ;;  %v336_v16 = vmax.f32 %v331_v13, 0.0 }
  0xf7   : > { %v333_v17 = vpop.f32.mrf.mxu0 }
  0xf8   : > { %v338_v18 = vpack.c.bf16 %v336_v16, %v336_v16  ;;  %v348_v19 = vsel %vm287_vm0, %v337_v15, 0 }
  0xfa   : > { %521 = vmatprep.subr.msk.bf16.mxu1 %vm287_vm0, %v338_v18 }
  0xfb   : > { %368 = vmatpush1.bf16.msra.mxu1 %v348_v19 }
  0xfe   : > { %522 = vmatmul.mubr.msk.bf16.vlgmr.msra.gmra.mxu1 %vm283_vm1, %v269_v20 }
 0x1be   : > { %v387_v23 = vpop.f32.mrf.mxu1 }
 0x1bf   : > { %v388_v24 = vadd.f32 %v387_v23, %v342_v22 }
 0x1c0   : > { %v389_v26 = vpop.f32.mrf.mxu1 }
 0x1c1   : > { %v396_v27 = vadd.f32 %v394_v21, %v388_v24  ;;  %v390_v28 = vadd.f32 %v389_v26, %v342_v22 }
 0x1c2   : > { %v391_v29 = vpop.f32.mrf.mxu1 }
 0x1c3   : > { %v398_v30 = vmax.f32 %v396_v27, 0.0  ;;  %v397_v31 = vadd.f32 %v395_v25, %v390_v28 }
 0x1c4   : > { %v392_v32 = vpop.f32.mrf.mxu1 }
 0x1c5   : > { %400 = vst [vmem:[%s255_s13] sm:$0xff] %v398_v30  ;;  %v399_v33 = vmax.f32 %v397_v31, 0.0 }
 0x1c7   : > { %401 = vst [vmem:[%s255_s13 + $0x8] sm:$0xff] %v399_v33 }
 0x1c8   : > { %639 = shalt.err (!%p636_p3)
}
 0x1c9   : > { %s640_s7 = scalar_lea.hbm %s417_s17, 256  ;;  %s644_s10 = scalar_lea.hbm %s881_s5, 512 }
 0x1ca   : > { %p641_p5 = scmp.ne.s32.totalorder %s417_s17, %s640_s7  ;;  %p645_p9 = scmp.lt.s32.totalorder %s417_s17, %s881_s5 }
 0x1cb   : > { %p646_p12 = scmp.lt.s32.totalorder %s644_s10, %s640_s7 }
 0x1cc   : > { %p642_p6 = pnand %p641_p5, %p781_p4 }
 0x1cd   : > { %p647_p10 = por %p646_p12, %p645_p9 }
 0x1ce   : > { %p643_p7 = pneg %p642_p6 }
 0x1d0   : > { %p648_p11 = pnand %p647_p10, %p643_p7 }
 0x1d2   : > { %651 = shalt.err (!%p648_p11)
}
 0x1d3   : > { %534 = dma.vmem_to_hbm [thread:$0]  (%p781_p4), %s420_s14, 256, %s417_s17, %s403_s24  }
 0x1d4 PF: > { %p546_p13 = scmp.ge.s32.totalorder %s706_s23, 2  ;;  %s431_s13 = sand.u32 1, %s686_s18  }
 0x1d5   : > { %s432_s15 = scalar_lea.sflag [#allocation4], %s431_s13 }
 0x1d6   : > { %p541_p0 = pnand %p546_p13, %p788_p8 }
 0x1d8   : > { %p542_p1 = pneg %p541_p0 }
 0x1da   : > { %681 = dma.done.wait (%p542_p1), %s432_s15, 256  }
 0x1db   : > { %683 = vsyncadd (%p542_p1), %s432_s15, 4294967040  ;;  %s19_s23 = sadd.s32 1, %s706_s23   ;;  %s886_s18 = smov %s690_s19 }
 0x1dc   : > { %p16_p2 = scmp.ge.s32.totalorder %s19_s23, 4   ;;  %s887_s19 = smov %s694_s20 }
 0x1dd   : > { %s888_s20 = smov %s794_s6  ;;  %s889_s21 = smov %s702_s22 }
 0x1de   : > { %s890_s22 = smov %s892_s26  ;;  %18 = sbr.rel (!%p16_p2) target bundleno = 5 (0x5), region = 80 }
 0x1e3   :  { %437 = vsyncpa [#allocation3], 1 }
 0x1e4   :  { %439 = vsyncpa [#allocation3 + $0x1], 1 }
 0x1e5   :  { %440 = vsyncpa [#allocation4], 1 }
 0x1e6   :  { %442 = vsyncpa [#allocation4 + $0x1], 1 }

</bundles_post_ra>
